<compile_context>
chip_gen: v7x
topology: tpu7x:2x2x1
jax: 0.10.0
libtpu: 0.0.40
codegen_flags: <defaults>
</compile_context>

<pallas_src>
import functools

import jax
import jax.numpy as jnp
from jax import lax
from jax.experimental import pallas as pl
from jax.experimental.pallas import tpu as pltpu


_INV_SQRT2 = 0.7071067811865476


def _gelu_exact_f32(h):
    # Exact erf-based GELU (torch.nn.GELU default), in f32.
    # TODO(synk): on v6e/v7x the polynomial could run in bf16 (bf16 VPU) to cut
    # VALU pressure; kept f32 for numerical parity across generations (v5e has
    # no bf16 VPU).
    return 0.5 * h * (1.0 + lax.erf(h * _INV_SQRT2))


# ----------------------------------------------------------------------------
# Kernels
# ----------------------------------------------------------------------------
def _ff_resident_kernel(x_ref, w1_ref, b1_ref, w2_ref, b2_ref, o_ref):
    # Full weights resident in VMEM; one row tile per grid step, no reduction axis.
    h = jnp.dot(x_ref[...], w1_ref[...], preferred_element_type=jnp.float32)
    h = _gelu_exact_f32(h + b1_ref[...].astype(jnp.float32))
    y = jnp.dot(h.astype(w2_ref.dtype), w2_ref[...],
                preferred_element_type=jnp.float32)
    o_ref[...] = (y + b2_ref[...].astype(jnp.float32)).astype(o_ref.dtype)


def _ff_streaming_kernel(x_ref, w1_ref, b1_ref, w2_ref, b2_ref, o_ref, acc_ref):
    # Hidden axis streamed as the trailing ("arbitrary") grid axis; f32 accumulator.
    k = pl.program_id(1)

    @pl.when(k == 0)
    def _():
        acc_ref[...] = jnp.zeros_like(acc_ref)

    h = jnp.dot(x_ref[...], w1_ref[...], preferred_element_type=jnp.float32)
    h = _gelu_exact_f32(h + b1_ref[...].astype(jnp.float32))
    acc_ref[...] += jnp.dot(h.astype(w2_ref.dtype), w2_ref[...],
                            preferred_element_type=jnp.float32)

    @pl.when(k == pl.num_programs(1) - 1)
    def _():
        o_ref[...] = (acc_ref[...] + b2_ref[...].astype(jnp.float32)).astype(o_ref.dtype)


# ----------------------------------------------------------------------------
# Planning helpers
# ----------------------------------------------------------------------------
def _round_up(x, m):
    return (x + m - 1) // m * m


def _row_align(dtype):
    # Sublane packing: f32 -> 8 rows, bf16 -> 16, int8/fp8 -> 32.
    return {4: 8, 2: 16, 1: 32}.get(jnp.dtype(dtype).itemsize, 8)


def _balanced_row_tile(m, tm_max, align):
    # Same tile count as tiling by tm_max, but sized to minimize padded work.
    n = max(1, -(-m // max(tm_max, 1)))
    return max(align, _round_up(-(-m // n), align))


def _vmem_capacity_bytes():
    try:
        info = pltpu.get_tpu_info()
        cap = getattr(info, "vmem_capacity_bytes", None)
        if cap:
            return int(cap)
    except Exception:
        pass
    return 64 << 20  # conservative default (v7x per-core size); safe everywhere


_BUFFERED1_OK = None


def _buffered1_supported():
    """Probe once whether pipeline_mode=pl.Buffered(1) lowers on this install."""
    global _BUFFERED1_OK
    if _BUFFERED1_OK is not None:
        return _BUFFERED1_OK
    try:
        def _probe(x_ref, o_ref):
            o_ref[...] = x_ref[...]

        spec = pl.BlockSpec((8, 128), lambda i: (0, 0),
                            pipeline_mode=pl.Buffered(1))
        out = pl.pallas_call(
            _probe,
            out_shape=jax.ShapeDtypeStruct((8, 128), jnp.float32),
            grid=(2,),
            in_specs=[spec],
            out_specs=pl.BlockSpec((8, 128), lambda i: (0, 0)),
        )(jnp.zeros((8, 128), jnp.float32))
        jax.block_until_ready(out)
        _BUFFERED1_OK = True
    except Exception:
        _BUFFERED1_OK = False
    return _BUFFERED1_OK


def _const_spec(shape, single_buffer):
    # Block whose index never changes: fetched once; single-buffer when supported.
    index_map = lambda *_: tuple(0 for _ in shape)
    if single_buffer:
        return pl.BlockSpec(shape, index_map, pipeline_mode=pl.Buffered(1))
    return pl.BlockSpec(shape, index_map)


# ----------------------------------------------------------------------------
# Public wrapper
# ----------------------------------------------------------------------------
def feed_forward(x, w1, b1, w2, b2, *, tm=256, th=512, resident=None):
    """ViT MLP forward. x: (..., dim); w1: (dim, hidden); w2: (hidden, dim).

    resident=None  -> auto (weights VMEM-resident when they fit),
    resident=False -> force hidden-axis streaming path (testing),
    resident=True  -> require residency (error if impossible).
    """
    orig_shape = x.shape
    dim = x.shape[-1]
    hidden = w1.shape[1]
    M = 1
    for s in x.shape[:-1]:
        M *= s

    in_sz = jnp.dtype(x.dtype).itemsize
    w_sz = jnp.dtype(w1.dtype).itemsize
    align = _row_align(x.dtype)

    cap = _vmem_capacity_bytes()
    budget = min(cap * 7 // 8, 112 << 20)  # ~56 MiB on v7x, ~112 MiB on v5e/v6e

    single_buf = _buffered1_supported()
    wbuf = 1 if single_buf else 2

    weight_bytes = 2 * dim * hidden * w_sz
    bias_bytes = (hidden + dim) * w_sz

    def resident_bytes(tm_):
        return (wbuf * (weight_bytes + bias_bytes)
                + 2 * tm_ * dim * (in_sz + in_sz)   # x + out tiles, double-buffered
                + tm_ * hidden * (4 + w_sz)         # f32 h + cast copy
                + tm_ * dim * 4                     # f32 second-matmul result
                + (2 << 20))                        # margin

    def streaming_bytes(tm_, th_):
        return (2 * 2 * dim * th_ * w_sz            # W1/W2 slabs, double-buffered
                + 2 * (th_ + dim) * w_sz            # b1 slab + b2
                + 2 * tm_ * dim * (in_sz + in_sz)   # x + out tiles
                + tm_ * dim * 4                     # f32 accumulator scratch
                + tm_ * th_ * (4 + w_sz)            # f32 h + cast copy
                + (2 << 20))

    # ---- Plan: prefer resident weights (DMA'd from HBM exactly once) ----
    plan = None
    if resident is not False:
        tm_r = _balanced_row_tile(M, tm, align)
        while resident_bytes(tm_r) > budget and tm_r > align:
            tm_r = max(align, _round_up(tm_r // 2, align))
        if resident_bytes(tm_r) <= budget:
            plan = ("resident", tm_r, hidden)
    if plan is None and resident is True:
        raise ValueError("Weights do not fit in VMEM; cannot honor resident=True.")
    if plan is None:
        # Streaming fallback: large row tile (>=512) amortizes weight re-fetches.
        tm_s = _balanced_row_tile(M, max(tm, 512), align)
        th_s = hidden
        if hidden % 128 == 0:
            start = min(max(128, (th // 128) * 128), hidden)
            for cand in range(start, 0, -128):
                if hidden % cand == 0:
                    th_s = cand
                    break
        while streaming_bytes(tm_s, th_s) > budget and tm_s > align:
            tm_s = max(align, _round_up(tm_s // 2, align))
        while streaming_bytes(tm_s, th_s) > budget and th_s % 256 == 0:
            th_s //= 2
        plan = ("streaming", tm_s, th_s)

    mode, tm_eff, th_eff = plan
    M_pad = _round_up(M, tm_eff)
    n_row = M_pad // tm_eff

    x2d = x.reshape(M, dim)
    if M_pad != M:
        x2d = jnp.pad(x2d, ((0, M_pad - M), (0, 0)))
    b1_2d = b1.reshape(1, hidden)
    b2_2d = b2.reshape(1, dim)

    # Honest cost estimate: weight traffic is multiplied by n_row only when streamed.
    flops = 4 * M_pad * dim * hidden
    w_traffic = (weight_bytes + bias_bytes) * (1 if mode == "resident" else n_row)
    cost = pl.CostEstimate(
        flops=int(flops),
        transcendentals=int(M_pad * hidden),
        bytes_accessed=int(2 * M_pad * dim * in_sz + w_traffic),
    )

    vmem_needed = (resident_bytes(tm_eff) if mode == "resident"
                   else streaming_bytes(tm_eff, th_eff))
    # Always set the scoped VMEM limit (v5e default is 16 MiB) and clamp to the
    # generation's physical capacity (64 MiB on v7x).
    vmem_limit = int(min(budget, max(vmem_needed * 5 // 4, 16 << 20)))

    if mode == "resident":
        grid_spec = pltpu.PrefetchScalarGridSpec(
            num_scalar_prefetch=0,
            grid=(n_row,),
            in_specs=[
                pl.BlockSpec((tm_eff, dim), lambda i: (i, 0)),   # x rows
                _const_spec((dim, hidden), single_buf),          # W1 (resident)
                _const_spec((1, hidden), single_buf),            # b1 (resident)
                _const_spec((hidden, dim), single_buf),          # W2 (resident)
                _const_spec((1, dim), single_buf),               # b2 (resident)
            ],
            out_specs=pl.BlockSpec((tm_eff, dim), lambda i: (i, 0)),
        )
        kernel = _ff_resident_kernel
        dim_sem = ("parallel",)
    else:
        # TODO(synk): on v5e, pipeline_mode=pl.Buffered(3) on the W1/W2 slabs can
        # hide DMA jitter; omitted to keep the streaming path portable.
        grid_spec = pltpu.PrefetchScalarGridSpec(
            num_scalar_prefetch=0,
            grid=(n_row, hidden // th_eff),
            in_specs=[
                pl.BlockSpec((tm_eff, dim), lambda i, k: (i, 0)),  # x rows (resident over k)
                pl.BlockSpec((dim, th_eff), lambda i, k: (0, k)),  # W1 hidden slab
                pl.BlockSpec((1, th_eff), lambda i, k: (0, k)),    # b1 slab
                pl.BlockSpec((th_eff, dim), lambda i, k: (k, 0)),  # W2 hidden slab
                _const_spec((1, dim), single_buf),                 # b2 (constant)
            ],
            out_specs=pl.BlockSpec((tm_eff, dim), lambda i, k: (i, 0)),
            scratch_shapes=[pltpu.VMEM((tm_eff, dim), jnp.float32)],
        )
        kernel = _ff_streaming_kernel
        dim_sem = ("parallel", "arbitrary")

    out = pl.pallas_call(
        kernel,
        out_shape=jax.ShapeDtypeStruct((M_pad, dim), x.dtype),
        grid_spec=grid_spec,
        compiler_params=pltpu.CompilerParams(
            dimension_semantics=dim_sem,
            vmem_limit_bytes=vmem_limit),
        cost_estimate=cost,
    )(x2d, w1, b1_2d, w2, b2_2d)

    if M_pad != M:
        out = out[:M]
    return out.reshape(orig_shape)


# ----------------------------------------------------------------------------
# Params / reference / demo
# ----------------------------------------------------------------------------
def init_params(key, dim, hidden_dim, dtype=jnp.float32):
    """Shapes match nn.Linear(dim, hidden) / nn.Linear(hidden, dim);
    biases ~ normal(std=1e-6) as in the module's _init_weights."""
    k1, k2, k3, k4 = jax.random.split(key, 4)
    w1 = (jax.random.normal(k1, (dim, hidden_dim), jnp.float32) / jnp.sqrt(dim)).astype(dtype)
    b1 = (jax.random.normal(k2, (hidden_dim,), jnp.float32) * 1e-6).astype(dtype)
    w2 = (jax.random.normal(k3, (hidden_dim, dim), jnp.float32) / jnp.sqrt(hidden_dim)).astype(dtype)
    b2 = (jax.random.normal(k4, (dim,), jnp.float32) * 1e-6).astype(dtype)
    return w1, b1, w2, b2


def _reference(x, w1, b1, w2, b2):
    """Pure-JAX reference mirroring the kernel's precision path."""
    dim = x.shape[-1]
    x2 = x.reshape(-1, dim)
    h = jnp.dot(x2, w1, preferred_element_type=jnp.float32) + b1.astype(jnp.float32)
    h = _gelu_exact_f32(h)
    y = jnp.dot(h.astype(w2.dtype), w2, preferred_element_type=jnp.float32) + b2.astype(jnp.float32)
    return y.astype(x.dtype).reshape(x.shape)


if __name__ == "__main__":
    key = jax.random.PRNGKey(0)
    kx, kp, kx2 = jax.random.split(key, 3)

    # Small, lane-aligned demo shapes; bf16 operands feed the MXU, f32 accumulation.
    B, S, dim, hidden_dim = 2, 8, 128, 256
    dtype = jnp.bfloat16

    x = jax.random.normal(kx, (B, S, dim), jnp.float32).astype(dtype)
    w1, b1, w2, b2 = init_params(kp, dim, hidden_dim, dtype)

    # Path 1: resident-weight path (weights DMA'd from HBM exactly once).
    y = jax.block_until_ready(feed_forward(x, w1, b1, w2, b2))
    y_ref = _reference(x, w1, b1, w2, b2)
    assert y.shape == (B, S, dim)
    assert jnp.allclose(y.astype(jnp.float32), y_ref.astype(jnp.float32),
                        atol=5e-2, rtol=5e-2)

    # Path 2: ragged row count (exercises balanced 16-aligned padding) with the
    # hidden-axis streaming / f32-accumulator path forced on.
    B2, S2 = 3, 7
    x2 = jax.random.normal(kx2, (B2, S2, dim), jnp.float32).astype(dtype)
    y2 = jax.block_until_ready(feed_forward(x2, w1, b1, w2, b2, th=128, resident=False))
    y2_ref = _reference(x2, w1, b1, w2, b2)
    assert y2.shape == (B2, S2, dim)
    assert jnp.allclose(y2.astype(jnp.float32), y2_ref.astype(jnp.float32),
                        atol=5e-2, rtol=5e-2)

    print("KERNEL_OK")
</pallas_src>

<mosaic_0001>
module attributes {stable_mosaic.version = 11 : i64} {
  func.func @_probe(%arg0: i32, %arg1: memref<8x128xf32, #tpu.memory_space<vmem>>, %arg2: memref<8x128xf32, #tpu.memory_space<vmem>>) attributes {dimension_semantics = [#tpu.dimension_semantics<arbitrary>], iteration_bounds = array<i64: 2>, scalar_prefetch = 0 : i64, scratch_operands = 0 : i64, tpu.core_type = #tpu.core_type<tc>, window_params = [{pipeline_mode = #tpu.pipeline_mode<synchronous>, transform_indices = @transform_0, window_bounds = array<i64: 8, 128>}, {pipeline_mode = #tpu.pipeline_mode<synchronous>, transform_indices = @transform_1, window_bounds = array<i64: 8, 128>}]} {
    %c0 = arith.constant 0 : index
    %c0_0 = arith.constant 0 : index
    %0 = vector.load %arg1[%c0, %c0_0] : memref<8x128xf32, #tpu.memory_space<vmem>>, vector<8x128xf32>
    %c0_1 = arith.constant 0 : index
    %c0_2 = arith.constant 0 : index
    %1 = vector.load %arg2[%c0_1, %c0_2] : memref<8x128xf32, #tpu.memory_space<vmem>>, vector<8x128xf32>
    tpu.vector_store %arg2[%c0_1, %c0_2], %0 {strides = array<i32>} : memref<8x128xf32, #tpu.memory_space<vmem>>, vector<8x128xf32>,
    return
  }
  func.func @transform_0(%arg0: i32) -> (i32, i32) {
    %c0_i32 = arith.constant 0 : i32
    %c0_i32_0 = arith.constant 0 : i32
    %c0_i32_1 = arith.constant 0 : i32
    return %c0_i32, %c0_i32_0 : i32, i32
  }
  func.func @transform_1(%arg0: i32) -> (i32, i32) {
    %c0_i32 = arith.constant 0 : i32
    %c0_i32_0 = arith.constant 0 : i32
    %c0_i32_1 = arith.constant 0 : i32
    return %c0_i32, %c0_i32_0 : i32, i32
  }
}

module attributes {stable_mosaic.version = 11 : i64} {
  func.func @_ff_resident_kernel(%arg0: i32, %arg1: memref<16x128xbf16, #tpu.memory_space<vmem>>, %arg2: memref<128x256xbf16, #tpu.memory_space<vmem>>, %arg3: memref<1x256xbf16, #tpu.memory_space<vmem>>, %arg4: memref<256x128xbf16, #tpu.memory_space<vmem>>, %arg5: memref<1x128xbf16, #tpu.memory_space<vmem>>, %arg6: memref<16x128xbf16, #tpu.memory_space<vmem>>) attributes {dimension_semantics = [#tpu.dimension_semantics<parallel>], iteration_bounds = array<i64: 1>, scalar_prefetch = 0 : i64, scratch_operands = 0 : i64, tpu.core_type = #tpu.core_type<tc>, window_params = [{transform_indices = @transform_0, window_bounds = array<i64: 16, 128>}, {pipeline_mode = #tpu.pipeline_mode<synchronous>, transform_indices = @transform_1, window_bounds = array<i64: 128, 256>}, {pipeline_mode = #tpu.pipeline_mode<synchronous>, transform_indices = @transform_2, window_bounds = array<i64: 1, 256>}, {pipeline_mode = #tpu.pipeline_mode<synchronous>, transform_indices = @transform_3, window_bounds = array<i64: 256, 128>}, {pipeline_mode = #tpu.pipeline_mode<synchronous>, transform_indices = @transform_4, window_bounds = array<i64: 1, 128>}, {transform_indices = @transform_5, window_bounds = array<i64: 16, 128>}]} {
    %c0 = arith.constant 0 : index
    %c0_0 = arith.constant 0 : index
    %0 = vector.load %arg1[%c0, %c0_0] : memref<16x128xbf16, #tpu.memory_space<vmem>>, vector<16x128xbf16>
    %c0_1 = arith.constant 0 : index
    %c0_2 = arith.constant 0 : index
    %1 = vector.load %arg2[%c0_1, %c0_2] : memref<128x256xbf16, #tpu.memory_space<vmem>>, vector<128x256xbf16>
    %cst = arith.constant dense<0.000000e+00> : vector<16x256xf32>
    %2 = tpu.matmul %0, %1, %cst {dimension_numbers = #tpu.dot_dimension_numbers<[1], [0], [0], [1], [0, 0, 1, 1], [], []>} : vector<16x128xbf16>, vector<128x256xbf16>, vector<16x256xf32> -> vector<16x256xf32>
    %c0_3 = arith.constant 0 : index
    %c0_4 = arith.constant 0 : index
    %3 = vector.load %arg3[%c0_3, %c0_4] : memref<1x256xbf16, #tpu.memory_space<vmem>>, vector<1x256xbf16>
    %4 = arith.extf %3 : vector<1x256xbf16> to vector<1x256xf32>
    %5 = vector.broadcast %4 : vector<1x256xf32> to vector<16x256xf32>
    %6 = arith.addf %2, %5 : vector<16x256xf32>
    %cst_5 = arith.constant 5.000000e-01 : f32
    %7 = vector.broadcast %cst_5 : f32 to vector<16x256xf32>
    %8 = arith.mulf %7, %6 : vector<16x256xf32>
    %cst_6 = arith.constant 0.707106769 : f32
    %9 = vector.broadcast %cst_6 : f32 to vector<16x256xf32>
    %10 = arith.mulf %6, %9 : vector<16x256xf32>
    %11 = math.erf %10 : vector<16x256xf32>
    %cst_7 = arith.constant 1.000000e+00 : f32
    %12 = vector.broadcast %cst_7 : f32 to vector<16x256xf32>
    %13 = arith.addf %12, %11 : vector<16x256xf32>
    %14 = arith.mulf %8, %13 : vector<16x256xf32>
    %15 = arith.truncf %14 : vector<16x256xf32> to vector<16x256xbf16>
    %c0_8 = arith.constant 0 : index
    %c0_9 = arith.constant 0 : index
    %16 = vector.load %arg4[%c0_8, %c0_9] : memref<256x128xbf16, #tpu.memory_space<vmem>>, vector<256x128xbf16>
    %cst_10 = arith.constant dense<0.000000e+00> : vector<16x128xf32>
    %17 = tpu.matmul %15, %16, %cst_10 {dimension_numbers = #tpu.dot_dimension_numbers<[1], [0], [0], [1], [0, 0, 1, 1], [], []>} : vector<16x256xbf16>, vector<256x128xbf16>, vector<16x128xf32> -> vector<16x128xf32>
    %c0_11 = arith.constant 0 : index
    %c0_12 = arith.constant 0 : index
    %18 = vector.load %arg5[%c0_11, %c0_12] : memref<1x128xbf16, #tpu.memory_space<vmem>>, vector<1x128xbf16>
    %19 = arith.extf %18 : vector<1x128xbf16> to vector<1x128xf32>
    %20 = vector.broadcast %19 : vector<1x128xf32> to vector<16x128xf32>
    %21 = arith.addf %17, %20 : vector<16x128xf32>
    %22 = arith.truncf %21 : vector<16x128xf32> to vector<16x128xbf16>
    %c0_13 = arith.constant 0 : index
    %c0_14 = arith.constant 0 : index
    %23 = vector.load %arg6[%c0_13, %c0_14] : memref<16x128xbf16, #tpu.memory_space<vmem>>, vector<16x128xbf16>
    tpu.vector_store %arg6[%c0_13, %c0_14], %22 {strides = array<i32>} : memref<16x128xbf16, #tpu.memory_space<vmem>>, vector<16x128xbf16>,
    return
  }
  func.func @transform_0(%arg0: i32) -> (i32, i32) {
    %c0_i32 = arith.constant 0 : i32
    %c0_i32_0 = arith.constant 0 : i32
    return %arg0, %c0_i32 : i32, i32
  }
  func.func @transform_1(%arg0: i32) -> (i32, i32) {
    %c0_i32 = arith.constant 0 : i32
    %c0_i32_0 = arith.constant 0 : i32
    %c0_i32_1 = arith.constant 0 : i32
    return %c0_i32, %c0_i32_0 : i32, i32
  }
  func.func @transform_2(%arg0: i32) -> (i32, i32) {
    %c0_i32 = arith.constant 0 : i32
    %c0_i32_0 = arith.constant 0 : i32
    %c0_i32_1 = arith.constant 0 : i32
    return %c0_i32, %c0_i32_0 : i32, i32
  }
  func.func @transform_3(%arg0: i32) -> (i32, i32) {
    %c0_i32 = arith.constant 0 : i32
    %c0_i32_0 = arith.constant 0 : i32
    %c0_i32_1 = arith.constant 0 : i32
    return %c0_i32, %c0_i32_0 : i32, i32
  }
  func.func @transform_4(%arg0: i32) -> (i32, i32) {
    %c0_i32 = arith.constant 0 : i32
    %c0_i32_0 = arith.constant 0 : i32
    %c0_i32_1 = arith.constant 0 : i32
    return %c0_i32, %c0_i32_0 : i32, i32
  }
  func.func @transform_5(%arg0: i32) -> (i32, i32) {
    %c0_i32 = arith.constant 0 : i32
    %c0_i32_0 = arith.constant 0 : i32
    return %arg0, %c0_i32 : i32, i32
  }
}

</mosaic_0001>

<bundles_post_ra>
// kernel: tpu_custom_call.1
= control target key start
LH: loop header
LB: loop body
LE: loop exit
PB: predicated region body
PF: predicated region fallthrough
CT: control target
= control target key end

     0   :  { %6 = vsyncpa [#allocation3], 0  ;;  %s340_s0 = inlined_call_operand.hbm [shape: f32[8,128], index: 0, kind: input, shape index: {}]   ;;  %s341_s1 = inlined_call_operand.hbm [shape: f32[8,128], index: 1, kind: output, shape index: {}]  }
   0x1   :  { %7 = vsyncpa [#allocation4], 0  ;;  %s261_s6 = smov 0  }
   0x2 LB: > { %s144_s7 = sadd.s32 4294967295, %s247_s6   ;;  %p145_p0 = scmp.ge.s32.totalorder %s247_s6, 1  ;;  %s247_s6 = sphi %s261_s6, %s13_s6  }
   0x3   : > { %p60_p1 = scmp.lt.s32.totalorder %s247_s6, 3  ;;  %p275_p3 = scmp.eq.s32.totalorder %s144_s7, 0 }
   0x4   : > { %s249_s10 = smov [#allocation2]   ;;  %s179_s15 = scalar_lea.hbm %s340_s0, 128 }
   0x5   : > { %p269_p2 = pnand %p145_p0, %p60_p1  ;;  %s73_s11 = sshll.u32 %s249_s10, 4  ;;  %s74_s11 = int_to_ptr.vmem [resolvable:$true] %s73_s11 }
   0x6   : > { %s346_s9 = scalar_select %p275_p3, 1, 0 }
   0x7   : > { %s345_s8 = scalar_select %p269_p2, 1, 0 }
   0x8   : > { %p161_p4 = pneg %p269_p2  ;;  %p180_p6 = scmp.ne.s32.totalorder %s340_s0, %s179_s15 }
   0x9   : > { %p186_p10 = scmp.lt.u32.totalorder %s179_s15, %s340_s0 }
   0xa   : > { %p283_p5 = pnand %p275_p3, %p161_p4 }
   0xc   : > { %p181_p7 = pneg %p283_p5 }
   0xe   : > { %p182_p8 = pnand %p181_p7, %p180_p6 }
  0x10   : > { %p183_p9 = pneg %p182_p8 }
  0x12   : > { %p188_p11 = pnand %p186_p10, %p183_p9 }
  0x14   : > { %191 = shalt.err (!%p188_p11)
}
  0x15   : > { %s192_s20 = scalar_lea.vmem %s74_s11, 128  ;;  %p200_p1 = scmp.lt.s32.totalorder %s74_s11, %s74_s11 }
  0x16   : > { %p193_p12 = scmp.ne.s32.totalorder %s74_s11, %s192_s20  ;;  %p201_p4 = scmp.lt.s32.totalorder %s192_s20, %s192_s20 }
  0x18   : > { %p195_p13 = pnand %p193_p12, %p181_p7  ;;  %p202_p3 = por %p201_p4, %p200_p1 }
  0x1a   : > { %p196_p0 = pneg %p195_p13 }
  0x1c   : > { %p203_p2 = pnand %p202_p3, %p196_p0 }
  0x1e   : > { %206 = shalt.err (!%p203_p2)
}
  0x1f   : > { %164 = dma.hbm_to_vmem [thread:$0]  (!%p283_p5), %s340_s0, 128, %s74_s11, [#allocation3]  }
  0x20   : > { %p348_p6 = scmp.ne.s32.totalorder %s345_s8, 0 }
  0x21   : > { %p349_p8 = scmp.ne.s32.totalorder (!%p348_p6), %s346_s9, 0 }
  0x22   : > { %86 = sbr.rel (%p348_p6) target bundleno = 67 (0x43), region = 24 }
  0x29   : > { %238 = dma.done.wait (%p349_p8), [#allocation3], 128  }
  0x2a   : > { %240 = vsyncadd (%p349_p8), [#allocation3], 4294967168  ;;  %s250_s23 = smov [#allocation5]   ;;  %p311_p2 = scmp.eq.s32.totalorder %s144_s7, 1  ;;  %v96_v0 = vld [vmem:[#allocation2] sm:$0xff] }
  0x2b   : > { %s105_s24 = sshll.u32 %s250_s23, 4  ;;  %97 = vst [vmem:[#allocation5] sm:$0xff] %v96_v0  ;;  %s106_s24 = int_to_ptr.vmem [resolvable:$true] %s105_s24 }
  0x2c   : > { %s207_s26 = scalar_lea.vmem %s106_s24, 128  ;;  %p214_p9 = scmp.lt.s32.totalorder %s106_s24, %s106_s24 }
  0x2d   : > { %p208_p3 = scmp.ne.s32.totalorder %s106_s24, %s207_s26  ;;  %p215_p10 = scmp.lt.s32.totalorder %s207_s26, %s207_s26 }
  0x2f   : > { %p209_p5 = pnand %p208_p3, %p311_p2  ;;  %p216_p11 = por %p215_p10, %p214_p9 }
  0x31   : > { %p210_p7 = pneg %p209_p5 }
  0x33   : > { %p217_p12 = pnand %p216_p11, %p210_p7 }
  0x35   : > { %220 = shalt.err (!%p217_p12)
}
  0x36   : > { %s221_s29 = scalar_lea.hbm %s341_s1, 128 }
  0x37   : > { %p222_p13 = scmp.ne.s32.totalorder %s341_s1, %s221_s29  ;;  %p227_p4 = scmp.lt.u32.totalorder %s221_s29, %s341_s1 }
  0x39   : > { %p223_p0 = pnand %p222_p13, %p311_p2 }
  0x3b   : > { %p224_p1 = pneg %p223_p0 }
  0x3d   : > { %p229_p6 = pnand %p227_p4, %p224_p1 }
  0x3f   : > { %232 = shalt.err (!%p229_p6)
}
  0x40   : > { %158 = dma.vmem_to_hbm [thread:$0]  (%p311_p2), %s106_s24, 128, %s341_s1, [#allocation4]  }
  0x41   : > { %242 = dma.done.wait (%p311_p2), [#allocation4], 128  }
  0x42   : > { %244 = vsyncadd (%p311_p2), [#allocation4], 4294967168 }
  0x43 PF: > { %s13_s6 = sadd.s32 1, %s247_s6  }
  0x44   : > { %p10_p8 = scmp.ge.s32.totalorder %s13_s6, 4  }
  0x46   :  { %12 = sbr.rel (!%p10_p8) target bundleno = 2 (0x2), region = 53 }
  0x4d   :  { %118 = vsyncpa [#allocation3], 1 }
  0x4e   :  { %120 = vsyncpa [#allocation3 + $0x1], 1 }
  0x4f   :  { %121 = vsyncpa [#allocation4], 1 }
  0x50   :  { %123 = vsyncpa [#allocation4 + $0x1], 1 }

// kernel: tpu_custom_call.1
= control target key start
LH: loop header
LB: loop body
LE: loop exit
PB: predicated region body
PF: predicated region fallthrough
CT: control target
= control target key end

     0   :  { %10 = vsyncpa [#allocation3], 0  ;;  %s774_s0 = inlined_call_operand.hbm [shape: bf16[16,128], index: 0, kind: input, shape index: {}]   ;;  %s775_s1 = inlined_call_operand.hbm [shape: bf16[128,256], index: 1, kind: input, shape index: {}]   ;;  %s776_s2 = inlined_call_operand.vmem [shape: bf16[1,256], index: 2, kind: input, shape index: {}]   ;;  %s777_s3 = inlined_call_operand.hbm [shape: bf16[256,128], index: 3, kind: input, shape index: {}]   ;;  %s778_s4 = inlined_call_operand.vmem [shape: bf16[1,128], index: 4, kind: input, shape index: {}]   ;;  %s779_s5 = inlined_call_operand.hbm [shape: bf16[16,128], index: 5, kind: output, shape index: {}]  }
   0x1   :  { %11 = vsyncpa [#allocation6], 0 }
   0x2   :  { %12 = vsyncpa [#allocation4], 0  ;;  %s672_s18 = smov [#allocation5]   ;;  %s578_s22 = scalar_lea.hbm %s775_s1, 2048 }
   0x3   :  { %s30_s19 = sshll.u32 %s672_s18, 4  ;;  %p579_p0 = scmp.ne.s32.totalorder %s775_s1, %s578_s22  ;;  %s31_s19 = int_to_ptr.vmem [resolvable:$true] %s30_s19 }
   0x4   :  { %p582_p1 = scmp.lt.u32.totalorder %s578_s22, %s775_s1 }
   0x6   :  { %p584_p2 = pnand %p582_p1, %p579_p0 }
   0x8   :  { %587 = shalt.err (!%p584_p2)
}
   0x9   :  { %s588_s27 = scalar_lea.vmem %s31_s19, 2048  ;;  %p593_p4 = scmp.lt.s32.totalorder %s31_s19, %s31_s19 }
   0xa   :  { %p589_p3 = scmp.ne.s32.totalorder %s31_s19, %s588_s27  ;;  %p594_p5 = scmp.lt.s32.totalorder %s588_s27, %s588_s27 }
   0xc   :  { %p595_p6 = por %p594_p5, %p593_p4 }
   0xe   :  { %p596_p7 = pnand %p595_p6, %p589_p3 }
  0x10   :  { %599 = shalt.err (!%p596_p7)
}
  0x11   :  { %s673_s28 = smov 128   ;;  %s674_s29 = smov 8  }
  0x12   :  { %36 = dma.hbm_to_vmem [thread:$0]  %s775_s1, 2048, %s31_s19, [#allocation6], %s673_s28, %s673_s28, %s674_s29  }
  0x13   :  { %s675_s7 = smov [#allocation2]   ;;  %s600_s11 = scalar_lea.hbm %s774_s0, 128 }
  0x14   :  { %s18_s8 = sshll.u32 %s675_s7, 4  ;;  %p601_p8 = scmp.ne.s32.totalorder %s774_s0, %s600_s11  ;;  %s19_s8 = int_to_ptr.vmem [resolvable:$true] %s18_s8 }
  0x15   :  { %p604_p9 = scmp.lt.u32.totalorder %s600_s11, %s774_s0 }
  0x17   :  { %p606_p10 = pnand %p604_p9, %p601_p8 }
  0x19   :  { %609 = shalt.err (!%p606_p10)
}
  0x1a   :  { %s610_s16 = scalar_lea.vmem %s19_s8, 128  ;;  %p615_p12 = scmp.lt.s32.totalorder %s19_s8, %s19_s8 }
  0x1b   :  { %p611_p11 = scmp.ne.s32.totalorder %s19_s8, %s610_s16  ;;  %p616_p13 = scmp.lt.s32.totalorder %s610_s16, %s610_s16 }
  0x1d   :  { %p617_p0 = por %p616_p13, %p615_p12 }
  0x1f   :  { %p618_p1 = pnand %p617_p0, %p611_p11 }
  0x21   :  { %621 = shalt.err (!%p618_p1)
}
  0x22   :  { %s676_s1 = smov 64   ;;  %s677_s17 = smov 4  }
  0x23   :  { %24 = dma.hbm_to_vmem [thread:$0]  %s774_s0, 128, %s19_s8, [#allocation3], %s676_s1, %s676_s1, %s677_s17  }
  0x24   :  { %s678_s20 = smov [#allocation7]   ;;  %s622_s24 = scalar_lea.hbm %s777_s3, 2048 }
  0x25   :  { %s44_s21 = sshll.u32 %s678_s20, 4  ;;  %p623_p2 = scmp.ne.s32.totalorder %s777_s3, %s622_s24  ;;  %s45_s21 = int_to_ptr.vmem [resolvable:$true] %s44_s21 }
  0x26   :  { %p626_p3 = scmp.lt.u32.totalorder %s622_s24, %s777_s3 }
  0x28   :  { %p628_p4 = pnand %p626_p3, %p623_p2 }
  0x2a   :  { %631 = shalt.err (!%p628_p4)
}
  0x2b   :  { %s632_s29 = scalar_lea.vmem %s45_s21, 2048  ;;  %p637_p6 = scmp.lt.s32.totalorder %s45_s21, %s45_s21 }
  0x2c   :  { %p633_p5 = scmp.ne.s32.totalorder %s45_s21, %s632_s29  ;;  %p638_p7 = scmp.lt.s32.totalorder %s632_s29, %s632_s29 }
  0x2e   :  { %p639_p8 = por %p638_p7, %p637_p6 }
  0x30   :  { %p640_p9 = pnand %p639_p8, %p633_p5 }
  0x32   :  { %643 = shalt.err (!%p640_p9)
}
  0x33   :  { %50 = dma.hbm_to_vmem [thread:$0]  %s777_s3, 2048, %s45_s21, [#allocation6], %s676_s1, %s676_s1, %s677_s17  }
  0x34   :  { %666 = dma.done.wait [#allocation3], 128  }
  0x35   :  { %667 = vsyncadd [#allocation3], 4294967168 }
  0x36   :  { %668 = dma.done.wait [#allocation6], 4096  }
  0x37   :  { %669 = vsyncadd [#allocation6], 4294963200  ;;  %v679_v0 = vmov 0   ;;  %v529_v1 = vld [vmem:[#allocation5 + $0x4] ss:$8 sps:$4 sm:$0xff]   ;;  %v553_v21 = vld [vmem:[#allocation2] sm:$0xff]   ;;  %v84_v34 = vlaneseq }
  0x38   :  { %220 = vmatprep.mubr.bf16.mxu0 %v679_v0  ;;  %v531_v2 = vld [vmem:[#allocation5] ss:$8 sps:$4 sm:$0xff]   ;;  %188 = vmatprep.subr.bf16.mxu0 %v529_v1  ;;  %v532_v3 = vld [vmem:[#allocation5 + $0x14] ss:$8 sps:$4 sm:$0xff]   ;;  %v534_v4 = vld [vmem:[#allocation5 + $0x10] ss:$8 sps:$4 sm:$0xff]  }
  0x39   :  { %189 = vmatpush1.bf16.msra.mxu0 %v531_v2  ;;  %v535_v5 = vld [vmem:[#allocation5 + $0x24] ss:$8 sps:$4 sm:$0xff]   ;;  %v537_v6 = vld [vmem:[#allocation5 + $0x20] ss:$8 sps:$4 sm:$0xff]   ;;  %v538_v7 = vld [vmem:[#allocation5 + $0x34] ss:$8 sps:$4 sm:$0xff]  }
  0x3a   :  { %190 = vmatprep.subr.bf16.mxu0 %v532_v3  ;;  %v540_v8 = vld [vmem:[#allocation5 + $0x30] ss:$8 sps:$4 sm:$0xff]   ;;  %v541_v9 = vld [vmem:[#allocation5 + $0x44] ss:$8 sps:$4 sm:$0xff]   ;;  %v543_v11 = vld [vmem:[#allocation5 + $0x40] ss:$8 sps:$4 sm:$0xff]  }
  0x3b   :  { %v554_v10 = vld [vmem:[#allocation7 + $0x40] sm:$0xff]   ;;  %v556_v13 = vld [vmem:[#allocation7 + $0x48] sm:$0xff]   ;;  %v544_v14 = vld [vmem:[#allocation5 + $0x54] ss:$8 sps:$4 sm:$0xff]   ;;  %v85_v35 = vshrl.u32 %v84_v34, 7  ;;  %s680_s8 = smov [#allocation8]  }
  0x3c   :  { %v555_v12 = vld [vmem:[#allocation7] sm:$0xff]   ;;  %498 = vmatprep.subr.bf16.mxu1 %v554_v10  ;;  %v557_v15 = vld [vmem:[#allocation7 + $0x8] sm:$0xff]   ;;  %v546_v16 = vld [vmem:[#allocation5 + $0x50] ss:$8 sps:$4 sm:$0xff]   ;;  %s443_s9 = sshll.u32 %s680_s8, 4  ;;  %s444_s9 = int_to_ptr.vmem [resolvable:$true] %s443_s9 }
  0x3d   :  { %191 = vmatpush1.bf16.msra.mxu0 %v534_v4  ;;  %499 = vmatpush3.bf16.msra.mxu1 %v555_v12  ;;  %v547_v17 = vld [vmem:[#allocation5 + $0x64] ss:$8 sps:$4 sm:$0xff]   ;;  %v549_v18 = vld [vmem:[#allocation5 + $0x60] ss:$8 sps:$4 sm:$0xff]   ;;  %v550_v19 = vld [vmem:[#allocation5 + $0x74] ss:$8 sps:$4 sm:$0xff]   ;;  %p649_p11 = scmp.lt.s32.totalorder %s444_s9, %s444_s9 }
  0x3e   :  { %192 = vmatprep.subr.bf16.mxu0 %v535_v5  ;;  %500 = vmatprep.subr.bf16.mxu1 %v556_v13  ;;  %v552_v20 = vld [vmem:[#allocation5 + $0x70] ss:$8 sps:$4 sm:$0xff]   ;;  %v562_v26 = vld [vmem:[#allocation7 + $0x60] sm:$0xff]   ;;  %v564_v28 = vld [vmem:[#allocation7 + $0x68] sm:$0xff]   ;;  %v86_v38 = vsub.s32 0, %v85_v35  ;;  %v90_v39 = vsub.s32 2, %v85_v35 }
  0x3f   :  { %v558_v22 = vld [vmem:[#allocation7 + $0x50] sm:$0xff]   ;;  %v560_v24 = vld [vmem:[#allocation7 + $0x58] sm:$0xff]   ;;  %v563_v27 = vld [vmem:[#allocation7 + $0x20] sm:$0xff]   ;;  %s644_s10 = scalar_lea.vmem %s444_s9, 128 }
  0x40   :  { %v559_v23 = vld [vmem:[#allocation7 + $0x10] sm:$0xff]   ;;  %v561_v25 = vld [vmem:[#allocation7 + $0x18] sm:$0xff]   ;;  %v565_v29 = vld [vmem:[#allocation7 + $0x28] sm:$0xff]   ;;  %p645_p10 = scmp.ne.s32.totalorder %s444_s9, %s644_s10  ;;  %p650_p12 = scmp.lt.s32.totalorder %s644_s10, %s644_s10 }
  0x41   :  { %193 = vmatpush1.bf16.msra.mxu0 %v537_v6  ;;  %501 = vmatpush3.bf16.msra.mxu1 %v557_v15  ;;  %v566_v30 = vld [vmem:[#allocation7 + $0x70] sm:$0xff]   ;;  %v568_v32 = vld [vmem:[#allocation7 + $0x78] sm:$0xff]  }
  0x42   :  { %194 = vmatprep.subr.bf16.mxu0 %v538_v7  ;;  %502 = vmatprep.subr.bf16.mxu1 %v558_v22  ;;  %v567_v31 = vld [vmem:[#allocation7 + $0x30] sm:$0xff]   ;;  %v569_v33 = vld [vmem:[#allocation7 + $0x38] sm:$0xff]   ;;  %p651_p13 = por %p650_p12, %p649_p11 }
  0x43   :  { %v81_v36 = vld [vmem:[%s776_s2] sm:$0x3] }
  0x44   :  { %v82_v37 = vunpack.c.l.bf16 %v81_v36  ;;  %v285_v10 = vld [vmem:[%s778_s4] sm:$0x1]  ;;  %p652_p0 = pnand %p651_p13, %p645_p10 }
  0x45   :  { %195 = vmatpush1.bf16.msra.mxu0 %v540_v8  ;;  %503 = vmatpush3.bf16.msra.mxu1 %v559_v23 }
  0x46   :  { %196 = vmatprep.subr.bf16.mxu0 %v541_v9  ;;  %504 = vmatprep.subr.bf16.mxu1 %v560_v24  ;;  %v87_v40 = vrot.slane %v82_v37, %v86_v38  ;;  %v91_v41 = vrot.slane %v82_v37, %v90_v39 }
  0x48   :  { %v97_v42 = vrot.slane %v87_v40, %v86_v38  ;;  %v101_v43 = vrot.slane %v91_v41, %v86_v38 }
  0x49   :  { %197 = vmatpush1.bf16.msra.mxu0 %v543_v11  ;;  %505 = vmatpush3.bf16.msra.mxu1 %v561_v25  ;;  %v286_v11 = vunpack.c.l.bf16 %v285_v10 }
  0x4a   :  { %198 = vmatprep.subr.bf16.mxu0 %v544_v14  ;;  %506 = vmatprep.subr.bf16.mxu1 %v562_v26 }
  0x4b   :  { %v290_v14 = vrot.slane %v286_v11, %v86_v38 }
  0x4d   :  { %199 = vmatpush1.bf16.msra.mxu0 %v546_v16  ;;  %507 = vmatpush3.bf16.msra.mxu1 %v563_v27 }
  0x4e   :  { %200 = vmatprep.subr.bf16.mxu0 %v547_v17  ;;  %508 = vmatprep.subr.bf16.mxu1 %v564_v28 }
  0x51   :  { %201 = vmatpush1.bf16.msra.mxu0 %v549_v18  ;;  %509 = vmatpush3.bf16.msra.mxu1 %v565_v29 }
  0x52   :  { %202 = vmatprep.subr.bf16.mxu0 %v550_v19  ;;  %510 = vmatprep.subr.bf16.mxu1 %v566_v30 }
  0x55   :  { %203 = vmatpush1.bf16.msra.mxu0 %v552_v20  ;;  %511 = vmatpush3.bf16.msra.mxu1 %v567_v31 }
  0x56   :  { %512 = vmatprep.subr.bf16.mxu1 %v568_v32 }
  0x58   :  { %221 = vmatmul.mubr.bf16.vlgmr.msra.gmra.mrb[0].mxu0 %v553_v21 }
  0x59   :  { %513 = vmatpush3.bf16.msra.mxu1 %v569_v33 }
 0x12b   :  { %v222_v44 = vpop.f32.mrb[0].mxu0 }
 0x12c   :  { %v223_v45 = vadd.f32 %v222_v44, %v97_v42  ;;  %v224_v46 = vpop.f32.mrb[1].mxu0 }
 0x12d   :  { %v225_v47 = vadd.f32 %v224_v46, %v101_v43  ;;  %v226_v48 = vpop.f32.mrb[2].mxu0 }
 0x12e   :  { %v235_v49 = vmul.f32 0.70710677, %v223_v45  ;;  %v227_v50 = vadd.f32 %v226_v48, %v97_v42  ;;  %v228_v51 = vpop.f32.mrb[3].mxu0  ;;  %v231_v62 = vmul.f32 0.5, %v223_v45 }
 0x12f   :  { %v236_v52 = vmul.f32 0.70710677, %v225_v47  ;;  %v229_v53 = vadd.f32 %v228_v51, %v101_v43  ;;  %v232_v1 = vmul.f32 0.5, %v225_v47 }
 0x130   :  { %570 = verf.f32 %v235_v49  ;;  %v237_v54 = vmul.f32 0.70710677, %v227_v50  ;;  %v233_v63 = vmul.f32 0.5, %v227_v50 }
 0x131   :  { %572 = verf.f32 %v236_v52  ;;  %v238_v55 = vmul.f32 0.70710677, %v229_v53  ;;  %v234_v2 = vmul.f32 0.5, %v229_v53 }
 0x132   :  { %574 = verf.f32 %v237_v54 }
 0x133   :  { %576 = verf.f32 %v238_v55 }
 0x13a   :  { %v571_v56 = vpop.eup %570 }
 0x13b   :  { %v573_v57 = vpop.eup %572  ;;  %v243_v58 = vadd.f32 1.0, %v571_v56 }
 0x13c   :  { %v575_v59 = vpop.eup %574  ;;  %v244_v60 = vadd.f32 1.0, %v573_v57 }
 0x13d   :  { %v577_v61 = vpop.eup %576  ;;  %v245_v0 = vadd.f32 1.0, %v575_v59  ;;  %v247_v4 = vmul.f32 %v243_v58, %v231_v62 }
 0x13e   :  { %v246_v3 = vadd.f32 1.0, %v577_v61  ;;  %v248_v6 = vmul.f32 %v244_v60, %v232_v1 }
 0x13f   :  { %v249_v5 = vmul.f32 %v245_v0, %v233_v63 }
 0x140   :  { %v250_v7 = vmul.f32 %v246_v3, %v234_v2 }
 0x141   :  { %v251_v8 = vpack.c.bf16 %v249_v5, %v247_v4 }
 0x142   :  { %v252_v9 = vpack.c.bf16 %v250_v7, %v248_v6 }
 0x144   :  { %419 = vmatprep.mubr.bf16.mxu1 %v252_v9 }
 0x145   :  { %420 = vmatmul.mubr.bf16.vlgmr.msra.gmra.mrb[0].mxu1 %v251_v8 }
 0x218   :  { %v514_v12 = vpop.f32.mrb[0].mxu1 }
 0x219   :  { %v515_v13 = vpop.f32.mrb[1].mxu1 }
 0x21a   :  { %v516_v15 = vadd.f32 %v515_v13, %v514_v12  ;;  %v517_v16 = vpop.f32.mrb[2].mxu1 }
 0x21b   :  { %v518_v17 = vpop.f32.mrb[3].mxu1 }
 0x21c   :  { %v519_v18 = vadd.f32 %v518_v17, %v517_v16  ;;  %v422_v19 = vadd.f32 %v516_v15, %v290_v14 }
 0x21e   :  { %v425_v20 = vadd.f32 %v519_v18, %v290_v14 }
 0x220   :  { %v496_v21 = vpack.c.bf16 %v425_v20, %v422_v19 }
 0x222   :  { %497 = vst [vmem:[#allocation8] sm:$0xff] %v496_v21  }
 0x223   :  { %655 = shalt.err (!%p652_p0)
}
 0x224   :  { %s656_s12 = scalar_lea.hbm %s779_s5, 128 }
 0x225   :  { %p657_p1 = scmp.ne.s32.totalorder %s779_s5, %s656_s12  ;;  %p660_p2 = scmp.lt.u32.totalorder %s656_s12, %s779_s5 }
 0x227   :  { %p662_p3 = pnand %p660_p2, %p657_p1 }
 0x229   :  { %665 = shalt.err (!%p662_p3)
}
 0x22a   :  { %449 = dma.vmem_to_hbm [thread:$0]  %s444_s9, 128, %s779_s5, [#allocation4], %s676_s1, %s676_s1, %s677_s17  }
 0x22b   :  { %670 = dma.done.wait [#allocation4], 128  }
 0x22c   :  { %671 = vsyncadd [#allocation4], 4294967168 }
 0x22d   :  { %453 = vsyncpa [#allocation3], 1 }
 0x22e   :  { %454 = vsyncpa [#allocation6], 1 }
 0x22f   :  { %455 = vsyncpa [#allocation4], 1 }

</bundles_post_ra>
